<compile_context>
chip_gen: v6e
topology: v6e:2x2x1
jax: 0.10.0
libtpu: 0.0.40
codegen_flags: <defaults>
</compile_context>

<pallas_src>
import math
import jax
import jax.numpy as jnp
from jax import lax
from jax.experimental import pallas as pl
from jax.experimental.pallas import tpu as pltpu

DENOM_EPS = 1e-5
MIB = 1024 * 1024


def _mosaic_params(semantics, nbytes):
    # 1.5x headroom + 2 MiB compiler-internal scratch; floor at 32 MiB, clamp well
    # below v5e/v6e physical (128 MiB).  TODO(synk): on v7x clamp to <64 MiB and
    # re-derive row tiles at production D/F.
    limit = max(min(int(1.5 * nbytes) + 2 * MIB, 96 * MIB), 32 * MIB)
    return pltpu.CompilerParams(dimension_semantics=semantics,
                                vmem_limit_bytes=limit)


# ----------------------------- Pallas kernels ------------------------------

def qkv_proj_kernel(x_ref, wqkv_ref, qkv_ref):
    # Fused Q|K|V projection: one bf16 MXU matmul, f32 accumulation, bf16 out.
    x = x_ref[...].astype(jnp.bfloat16)
    qkv_ref[...] = jnp.dot(x, wqkv_ref[...],
                           preferred_element_type=jnp.float32).astype(qkv_ref.dtype)


def cos_attn_oproj_kernel(cs_q_ref, cs_k_ref, q_ref, k_ref, v_ref, wo_ref, o_ref):
    """cosFormer non-causal linear attention + fused output projection.

    One grid point = one (batch, head).  phi = relu (kernel='relu'); key-side
    padding mask is pre-folded into cs_k.  cos/sin branches fused into one
    2*Dh-deep contraction:
        O_h = Q_cat (K_cat^T V) / (Q_cat sum_s(K_cat) + eps)
    The per-head result is projected through wo[h*Dh:(h+1)*Dh, :] and accumulated
    into the resident (S, D) f32 output block across the head axis.
    """
    h = pl.program_id(1)

    q = jnp.maximum(q_ref[0], 0)               # phi(Q)   (S, Dh) bf16
    k = jnp.maximum(k_ref[0], 0)               # phi(K)   (S, Dh) bf16
    v = v_ref[0]                                # (S, Dh) bf16
    # Keep the reweighted intermediates in bf16 (halves vreg/VMEM pressure).
    # TODO(synk): on v5e (no bf16 VPU) keep these multiplies in f32 and split the
    # fused 2Dh contraction into two Dh-deep dots.
    cs_q = cs_q_ref[0].astype(jnp.bfloat16)     # (S, 2)  [cos | sin]
    cs_k = cs_k_ref[0].astype(jnp.bfloat16)     # (S, 2)  key-padding mask pre-folded

    q_cat = jnp.concatenate([q * cs_q[:, 0:1], q * cs_q[:, 1:2]], axis=-1)  # (S, 2Dh) bf16
    k_cat = jnp.concatenate([k * cs_k[:, 0:1], k * cs_k[:, 1:2]], axis=-1)  # (S, 2Dh) bf16

    dn = (((0,), (0,)), ((), ()))               # contract over the sequence axis
    # TODO(synk): verify via pl.lower_as_mlir that this transposed-LHS contraction
    # lowers without an XLU vxpose of k_cat; if not, compute v^T @ k_cat instead.
    kv = lax.dot_general(k_cat, v, dn, preferred_element_type=jnp.float32)  # (2Dh, Dh) f32
    # kv is cast to bf16 for the MXU; switch to an f32 matmul here if strict parity
    # at long sequences is required.
    num = jnp.dot(q_cat, kv.astype(jnp.bfloat16),
                  preferred_element_type=jnp.float32)                       # (S, Dh) f32

    z = jnp.sum(k_cat, axis=0, keepdims=True, dtype=jnp.float32)            # (1, 2Dh) f32
    den = jnp.sum(q_cat * z, axis=-1, keepdims=True,
                  dtype=jnp.float32) + DENOM_EPS                            # (S, 1)  f32

    attn_h = (num * pl.reciprocal(den, approx=True)).astype(jnp.bfloat16)   # (S, Dh)

    # Fused output projection: per-head contribution into the resident f32 block.
    contrib = jnp.dot(attn_h, wo_ref[...], preferred_element_type=jnp.float32)  # (S, D)

    @pl.when(h == 0)
    def _():
        o_ref[0] = contrib

    @pl.when(h > 0)
    def _():
        o_ref[0] = o_ref[0] + contrib


def residual_ffn_kernel(rw_ref, proj_ref, x_ref, w1_ref, w2_ref, o_ref):
    # Fused ReZero residual around the (already projected) attention output followed
    # by ReZero residual around the FFN.  Dropout is identity in eval.
    # NOTE: a single resweight is shared by both sublayers, as in MHA_block_rezero.
    rw = rw_ref[0]                              # SMEM scalar
    y = x_ref[...] + rw * proj_ref[...]         # attention residual, f32
    # TODO(synk): at production D/F on v7x, chunk the (tm, F) hidden over F and
    # accumulate the second matmul instead of materializing it whole.
    hdn = jnp.maximum(jnp.dot(y.astype(jnp.bfloat16), w1_ref[...],
                              preferred_element_type=jnp.float32), 0.0)
    ff = jnp.dot(hdn.astype(jnp.bfloat16), w2_ref[...],
                 preferred_element_type=jnp.float32)
    o_ref[...] = y + rw * ff                    # FFN residual, f32


# ------------------------------- Wrappers -----------------------------------

def qkv_proj(x2d, wqkv, tm):
    """x2d: (M, D) f32, wqkv: (D, 3D) bf16 -> (M, 3D) bf16."""
    M, D = x2d.shape
    D3 = wqkv.shape[1]
    nbytes = (2 * tm * D * 4          # x row tiles, double-buffered, f32
              + D * D3 * 2            # fused weight, single-buffered, bf16
              + 2 * tm * D3 * 2)      # fused qkv output tiles, double-buffered, bf16
    return pl.pallas_call(
        qkv_proj_kernel,
        out_shape=jax.ShapeDtypeStruct((M, D3), jnp.bfloat16),
        grid=(pl.cdiv(M, tm),),
        in_specs=[pl.BlockSpec((tm, D), lambda i: (i, 0)),
                  # Constant index_map -> single-buffer the resident weight.
                  pl.BlockSpec((D, D3), lambda i: (0, 0),
                               pipeline_mode=pl.Buffered(1))],
        out_specs=pl.BlockSpec((tm, D3), lambda i: (i, 0)),
        compiler_params=_mosaic_params(("parallel",), nbytes),
    )(x2d, wqkv)


def cos_attention_oproj(qkv, wo, cs_q, cs_k, n_heads):
    """qkv: (B, S, 3D) bf16; wo: (D, D) bf16; cs_*: (B, S, 2) f32 -> (B, S, D) f32."""
    B, S, D3 = qkv.shape
    D = D3 // 3
    H = n_heads
    Dh = D // H

    cs_spec = pl.BlockSpec((1, S, 2), lambda b, h: (b, 0, 0))
    # Head h lives at lane-block offsets h (Q), H+h (K), 2H+h (V) of the fused buffer.
    q_spec = pl.BlockSpec((1, S, Dh), lambda b, h: (b, 0, h))
    k_spec = pl.BlockSpec((1, S, Dh), lambda b, h: (b, 0, H + h))
    v_spec = pl.BlockSpec((1, S, Dh), lambda b, h: (b, 0, 2 * H + h))
    wo_spec = pl.BlockSpec((Dh, D), lambda b, h: (h, 0))
    out_spec = pl.BlockSpec((1, S, D), lambda b, h: (b, 0, 0))   # resident across h

    nbytes = (2 * 2 * S * 2 * 4        # cs_q / cs_k tiles, double-buffered, f32
              + 2 * 3 * S * Dh * 2     # q/k/v head tiles, double-buffered, bf16
              + 2 * Dh * D * 2         # wo row slice, double-buffered, bf16
              + 2 * S * D * 4          # resident f32 output block
              + 2 * S * 2 * Dh * 2     # q_cat / k_cat bf16 intermediates
              + 2 * Dh * Dh * 4)       # kv f32
    # TODO(synk): for long S (especially v7x, 64 MiB VMEM) add an S-tile grid axis with
    # VMEM scratch accumulators for kv / z instead of loading the whole sequence.
    return pl.pallas_call(
        cos_attn_oproj_kernel,
        out_shape=jax.ShapeDtypeStruct((B, S, D), jnp.float32),
        grid=(B, H),
        in_specs=[cs_spec, cs_spec, q_spec, k_spec, v_spec, wo_spec],
        out_specs=out_spec,
        compiler_params=_mosaic_params(("parallel", "arbitrary"), nbytes),
    )(cs_q, cs_k, qkv, qkv, qkv, wo)


def residual_ffn(proj2d, x2d, w1, w2, resweight, tm):
    """proj2d, x2d: (M, D) f32; w1: (D, F), w2: (F, D) bf16 -> (M, D) f32."""
    M, D = x2d.shape
    F = w1.shape[1]
    row_spec = pl.BlockSpec((tm, D), lambda i: (i, 0))
    nbytes = (2 * 2 * tm * D * 4       # proj + x row tiles, double-buffered, f32
              + (D * F + F * D) * 2    # w1 / w2, single-buffered, bf16
              + tm * F * 4             # FFN hidden, f32
              + 2 * tm * D * 4)        # output tiles, double-buffered, f32
    return pl.pallas_call(
        residual_ffn_kernel,
        out_shape=jax.ShapeDtypeStruct((M, D), jnp.float32),
        grid=(pl.cdiv(M, tm),),
        in_specs=[pl.BlockSpec(memory_space=pltpu.MemorySpace.SMEM),  # resweight
                  row_spec, row_spec,
                  pl.BlockSpec((D, F), lambda i: (0, 0), pipeline_mode=pl.Buffered(1)),
                  pl.BlockSpec((F, D), lambda i: (0, 0), pipeline_mode=pl.Buffered(1))],
        out_specs=row_spec,
        compiler_params=_mosaic_params(("parallel",), nbytes),
    )(resweight, proj2d, x2d, w1, w2)


def mha_block_rezero(x, p, cs_q, cs_k, n_heads, tm):
    B, S, D = x.shape
    x2d = x.reshape(B * S, D)
    qkv = qkv_proj(x2d, p["wqkv"], tm)                                    # (B*S, 3D) bf16
    proj = cos_attention_oproj(qkv.reshape(B, S, 3 * D), p["wo"],
                               cs_q, cs_k, n_heads)                       # (B, S, D) f32
    x2d = residual_ffn(proj.reshape(B * S, D), x2d,
                       p["w1"], p["w2"], p["resweight"], tm)
    return x2d.reshape(B, S, D)


def get_cos_weights(lengths, max_len):
    # cos[i, j] = cos(pi/2 * j / lengths[i]), sin likewise (per the docstring; the
    # reference's accidental `.to(lengths)` integer truncation is not replicated).
    idxs = (math.pi / 2.0) * jnp.arange(max_len, dtype=jnp.float32)
    idxs = idxs[None, :] / lengths[:, None].astype(jnp.float32)
    return jnp.cos(idxs), jnp.sin(idxs)


def kernel_transformer_forward(x, attention_mask, lengths, params, n_heads, tm=256):
    # use_cos=True -> cosine reweighting, no positional embeddings.
    B, S, D = x.shape
    cos, sin = get_cos_weights(lengths, S)                         # (B, S) each
    cs_q = jnp.stack([cos, sin], axis=-1)                          # (B, S, 2) query side
    cs_k = cs_q * attention_mask.astype(jnp.float32)[:, :, None]   # key mask pre-folded
    # Row tile for the streamed proj/FFN kernels.  Keep 256+ on v5e/v6e (128 MiB VMEM);
    # TODO(synk): cap at ~128 on v7x (64 MiB VMEM) at production D/F.
    tm = min(tm, B * S)
    for p in params:
        x = mha_block_rezero(x, p, cs_q, cs_k, n_heads, tm)
    return x


# ----------------------------- Parameter init -------------------------------

def xavier_uniform(key, shape):
    fan_in, fan_out = shape
    a = math.sqrt(6.0 / (fan_in + fan_out))
    return jax.random.uniform(key, shape, jnp.float32, -a, a)


def init_params(key, d_model, n_layers, ffn_ratio):
    params = []
    for layer in range(n_layers):
        ks = jax.random.split(jax.random.fold_in(key, layer), 6)
        # Per-matrix Xavier init (matches the reference), then Q|K|V fused into one
        # (D, 3D) weight.  Weights stored bf16 (native MXU input); matmuls accumulate f32.
        wq = xavier_uniform(ks[0], (d_model, d_model))
        wk = xavier_uniform(ks[1], (d_model, d_model))
        wv = xavier_uniform(ks[2], (d_model, d_model))
        params.append(dict(
            wqkv=jnp.concatenate([wq, wk, wv], axis=1).astype(jnp.bfloat16),
            wo=xavier_uniform(ks[3], (d_model, d_model)).astype(jnp.bfloat16),
            w1=xavier_uniform(ks[4], (d_model, ffn_ratio * d_model)).astype(jnp.bfloat16),
            w2=xavier_uniform(ks[5], (ffn_ratio * d_model, d_model)).astype(jnp.bfloat16),
            # ReZero initializes resweight to 0 (making the block an identity);
            # use 0.1 so the attention / FFN kernels actually contribute.
            resweight=jnp.full((1,), 0.1, jnp.float32),
        ))
    return params


# --------------------------------- Main --------------------------------------

if __name__ == "__main__":
    # Dh = D // H = 128 so per-head blocks are lane-aligned.
    B, S, D, H, L, FFN_RATIO = 2, 16, 256, 2, 2, 4

    key = jax.random.PRNGKey(0)
    k_x, k_p = jax.random.split(key)

    # TODO(synk): the reference forward never applies the emb_in lookup its docstring
    # describes (it is not even constructed in __init__), so we feed pre-embedded
    # float activations [B, S, d_model] directly as `x`.
    x = jax.random.normal(k_x, (B, S, D), jnp.float32)
    lengths = jnp.array([16, 11], dtype=jnp.int32)
    attention_mask = (jnp.arange(S)[None, :] < lengths[:, None]).astype(jnp.int32)

    params = init_params(k_p, D, L, FFN_RATIO)

    out = kernel_transformer_forward(x, attention_mask, lengths, params, H)
    out = jax.block_until_ready(out)
    assert out.shape == (B, S, D) and out.dtype == jnp.float32
    assert bool(jnp.all(jnp.isfinite(out)))
    print("KERNEL_OK")
</pallas_src>

<mosaic_0001>
module attributes {stable_mosaic.version = 11 : i64} {
  func.func @qkv_proj_kernel(%arg0: i32, %arg1: memref<32x256xf32, #tpu.memory_space<vmem>>, %arg2: memref<256x768xbf16, #tpu.memory_space<vmem>>, %arg3: memref<32x768xbf16, #tpu.memory_space<vmem>>) attributes {dimension_semantics = [#tpu.dimension_semantics<parallel>], iteration_bounds = array<i64: 1>, scalar_prefetch = 0 : i64, scratch_operands = 0 : i64, tpu.core_type = #tpu.core_type<tc>, window_params = [{transform_indices = @transform_0, window_bounds = array<i64: 32, 256>}, {pipeline_mode = #tpu.pipeline_mode<synchronous>, transform_indices = @transform_1, window_bounds = array<i64: 256, 768>}, {transform_indices = @transform_2, window_bounds = array<i64: 32, 768>}]} {
    %c0 = arith.constant 0 : index
    %c0_0 = arith.constant 0 : index
    %0 = vector.load %arg1[%c0, %c0_0] : memref<32x256xf32, #tpu.memory_space<vmem>>, vector<32x256xf32>
    %1 = arith.truncf %0 : vector<32x256xf32> to vector<32x256xbf16>
    %c0_1 = arith.constant 0 : index
    %c0_2 = arith.constant 0 : index
    %2 = vector.load %arg2[%c0_1, %c0_2] : memref<256x768xbf16, #tpu.memory_space<vmem>>, vector<256x768xbf16>
    %cst = arith.constant dense<0.000000e+00> : vector<32x768xf32>
    %3 = tpu.matmul %1, %2, %cst {dimension_numbers = #tpu.dot_dimension_numbers<[1], [0], [0], [1], [0, 0, 1, 1], [], []>} : vector<32x256xbf16>, vector<256x768xbf16>, vector<32x768xf32> -> vector<32x768xf32>
    %4 = arith.truncf %3 : vector<32x768xf32> to vector<32x768xbf16>
    %c0_3 = arith.constant 0 : index
    %c0_4 = arith.constant 0 : index
    %5 = vector.load %arg3[%c0_3, %c0_4] : memref<32x768xbf16, #tpu.memory_space<vmem>>, vector<32x768xbf16>
    tpu.vector_store %arg3[%c0_3, %c0_4], %4 {strides = array<i32>} : memref<32x768xbf16, #tpu.memory_space<vmem>>, vector<32x768xbf16>,
    return
  }
  func.func @transform_0(%arg0: i32) -> (i32, i32) {
    %c0_i32 = arith.constant 0 : i32
    %c0_i32_0 = arith.constant 0 : i32
    return %arg0, %c0_i32 : i32, i32
  }
  func.func @transform_1(%arg0: i32) -> (i32, i32) {
    %c0_i32 = arith.constant 0 : i32
    %c0_i32_0 = arith.constant 0 : i32
    %c0_i32_1 = arith.constant 0 : i32
    return %c0_i32, %c0_i32_0 : i32, i32
  }
  func.func @transform_2(%arg0: i32) -> (i32, i32) {
    %c0_i32 = arith.constant 0 : i32
    %c0_i32_0 = arith.constant 0 : i32
    return %arg0, %c0_i32 : i32, i32
  }
}

</mosaic_0001>

<bundles_post_ra>
// kernel: tpu_custom_call.1
= control target key start
LH: loop header
LB: loop body
LE: loop exit
PB: predicated region body
PF: predicated region fallthrough
CT: control target
= control target key end

     0   :  { %7 = vsyncpa [#allocation3], 0  ;;  %s1310_s0 = inlined_call_operand.hbm [shape: f32[32,256], index: 0, kind: input, shape index: {}]   ;;  %s1311_s1 = inlined_call_operand.hbm [shape: bf16[256,768], index: 1, kind: input, shape index: {}]   ;;  %s1312_s2 = inlined_call_operand.hbm [shape: bf16[32,768], index: 2, kind: output, shape index: {}]  }
   0x1   :  { %8 = vsyncpa [#allocation6], 0 }
   0x2   :  { %9 = vsyncpa [#allocation4], 0  ;;  %s1258_s9 = smov [#allocation2]  }
   0x3   :  { %s15_s10 = sshll.u32 %s1258_s9, 4  ;;  %s16_s10 = int_to_ptr.vmem [resolvable:$true] %s15_s10 }
   0x4   :  { %s1200_s11 = scalar_lea.vmem %s16_s10, 1024  ;;  %p1205_p1 = scmp.lt.s32.totalorder %s16_s10, %s16_s10 }
   0x5   :  { %p1201_p0 = scmp.ne.s32.totalorder %s16_s10, %s1200_s11  ;;  %p1206_p2 = scmp.lt.s32.totalorder %s1200_s11, %s1200_s11 }
   0x7   :  { %p1207_p3 = por %p1206_p2, %p1205_p1 }
   0x9   :  { %p1208_p4 = pnand %p1207_p3, %p1201_p0 }
   0xb   :  { %1211 = shalt.err (!%p1208_p4)
}
   0xc   :  { %s1259_s12 = smov 256   ;;  %s1260_s13 = smov 16  }
   0xd   :  { %21 = dma.hbm_to_vmem [thread:$0]  %s1310_s0, 1024, %s16_s10, [#allocation3], %s1259_s12, %s1259_s12, %s1260_s13  }
   0xe   :  { %s1261_s16 = smov [#allocation5]  }
   0xf   :  { %s27_s17 = sshll.u32 %s1261_s16, 4  ;;  %s28_s17 = int_to_ptr.vmem [resolvable:$true] %s27_s17 }
  0x10   :  { %s1220_s18 = scalar_lea.vmem %s28_s17, 12288  ;;  %p1225_p6 = scmp.lt.s32.totalorder %s28_s17, %s28_s17 }
  0x11   :  { %p1221_p5 = scmp.ne.s32.totalorder %s28_s17, %s1220_s18  ;;  %p1226_p7 = scmp.lt.s32.totalorder %s1220_s18, %s1220_s18 }
  0x13   :  { %p1227_p8 = por %p1226_p7, %p1225_p6 }
  0x15   :  { %p1228_p9 = pnand %p1227_p8, %p1221_p5 }
  0x17   :  { %1231 = shalt.err (!%p1228_p9)
}
  0x18   :  { %s1262_s19 = smov 384   ;;  %s1263_s20 = smov 24  }
  0x19   :  { %33 = dma.hbm_to_vmem [thread:$0]  %s1311_s1, 12288, %s28_s17, [#allocation6], %s1262_s19, %s1262_s19, %s1263_s20  }
  0x1a   :  { %1252 = dma.done.wait [#allocation3], 1024  }
  0x1b   :  { %1253 = vsyncadd [#allocation3], 4294966272 }
  0x1c   :  { %1254 = dma.done.wait [#allocation6], 12288  }
  0x1d   :  { %1255 = vsyncadd [#allocation6], 4294955008  ;;  %v1048_v0 = vld [vmem:[#allocation5 + $0x154] ss:$24 sps:$4 sm:$0xff]   ;;  %v1052_v2 = vld [vmem:[#allocation5 + $0x150] ss:$24 sps:$4 sm:$0xff]  }
  0x1e   :  { %v1050_v1 = vld [vmem:[#allocation5 + $0x15c] ss:$24 sps:$4 sm:$0xff]   ;;  %628 = vmatprep.subr.bf16.mxu0 %v1048_v0  ;;  %v1053_v3 = vld [vmem:[#allocation5 + $0x158] ss:$24 sps:$4 sm:$0xff]   ;;  %v1056_v5 = vld [vmem:[#allocation5 + $0x12c] ss:$24 sps:$4 sm:$0xff]  }
  0x1f   :  { %681 = vmatprep.subr.bf16.mxu1 %v1050_v1  ;;  %v1054_v4 = vld [vmem:[#allocation5 + $0x124] ss:$24 sps:$4 sm:$0xff]   ;;  %629 = vmatpush1.bf16.msra.mxu0 %v1052_v2  ;;  %v1058_v6 = vld [vmem:[#allocation5 + $0x120] ss:$24 sps:$4 sm:$0xff]   ;;  %v1060_v8 = vld [vmem:[#allocation5 + $0xf4] ss:$24 sps:$4 sm:$0xff]  }
  0x20   :  { %682 = vmatpush1.bf16.msra.mxu1 %v1053_v3  ;;  %630 = vmatprep.subr.bf16.mxu0 %v1054_v4  ;;  %v1059_v7 = vld [vmem:[#allocation5 + $0x128] ss:$24 sps:$4 sm:$0xff]   ;;  %v1062_v9 = vld [vmem:[#allocation5 + $0xfc] ss:$24 sps:$4 sm:$0xff]   ;;  %v1065_v11 = vld [vmem:[#allocation5 + $0xf8] ss:$24 sps:$4 sm:$0xff]  }
  0x21   :  { %683 = vmatprep.subr.bf16.mxu1 %v1056_v5  ;;  %v1064_v10 = vld [vmem:[#allocation5 + $0xf0] ss:$24 sps:$4 sm:$0xff]   ;;  %v1066_v12 = vld [vmem:[#allocation5 + $0xc4] ss:$24 sps:$4 sm:$0xff]   ;;  %v1070_v14 = vld [vmem:[#allocation5 + $0xc0] ss:$24 sps:$4 sm:$0xff]  }
  0x22   :  { %v1068_v13 = vld [vmem:[#allocation5 + $0xcc] ss:$24 sps:$4 sm:$0xff]   ;;  %v1071_v15 = vld [vmem:[#allocation5 + $0xc8] ss:$24 sps:$4 sm:$0xff]   ;;  %v1074_v17 = vld [vmem:[#allocation5 + $0x9c] ss:$24 sps:$4 sm:$0xff]  }
  0x23   :  { %631 = vmatpush1.bf16.msra.mxu0 %v1058_v6  ;;  %v1072_v16 = vld [vmem:[#allocation5 + $0x94] ss:$24 sps:$4 sm:$0xff]   ;;  %v1076_v18 = vld [vmem:[#allocation5 + $0x90] ss:$24 sps:$4 sm:$0xff]   ;;  %v1078_v20 = vld [vmem:[#allocation5 + $0x64] ss:$24 sps:$4 sm:$0xff]  }
  0x24   :  { %684 = vmatpush1.bf16.msra.mxu1 %v1059_v7  ;;  %632 = vmatprep.subr.bf16.mxu0 %v1060_v8  ;;  %v1077_v19 = vld [vmem:[#allocation5 + $0x98] ss:$24 sps:$4 sm:$0xff]   ;;  %v1080_v21 = vld [vmem:[#allocation5 + $0x6c] ss:$24 sps:$4 sm:$0xff]   ;;  %v1083_v23 = vld [vmem:[#allocation5 + $0x68] ss:$24 sps:$4 sm:$0xff]  }
  0x25   :  { %685 = vmatprep.subr.bf16.mxu1 %v1062_v9  ;;  %v1082_v22 = vld [vmem:[#allocation5 + $0x60] ss:$24 sps:$4 sm:$0xff]   ;;  %v1084_v24 = vld [vmem:[#allocation5 + $0x34] ss:$24 sps:$4 sm:$0xff]   ;;  %v1088_v26 = vld [vmem:[#allocation5 + $0x30] ss:$24 sps:$4 sm:$0xff]  }
  0x26   :  { %v1086_v25 = vld [vmem:[#allocation5 + $0x3c] ss:$24 sps:$4 sm:$0xff]   ;;  %v1089_v27 = vld [vmem:[#allocation5 + $0x38] ss:$24 sps:$4 sm:$0xff]   ;;  %v1092_v29 = vld [vmem:[#allocation5 + $0xc] ss:$24 sps:$4 sm:$0xff]  }
  0x27   :  { %633 = vmatpush1.bf16.msra.mxu0 %v1064_v10  ;;  %v1090_v28 = vld [vmem:[#allocation5 + $0x4] ss:$24 sps:$4 sm:$0xff]   ;;  %v1094_v30 = vld [vmem:[#allocation5] ss:$24 sps:$4 sm:$0xff]   ;;  %v1096_v32 = vld [vmem:[#allocation5 + $0x2d4] ss:$24 sps:$4 sm:$0xff]  }
  0x28   :  { %686 = vmatpush1.bf16.msra.mxu1 %v1065_v11  ;;  %634 = vmatprep.subr.bf16.mxu0 %v1066_v12  ;;  %v1095_v31 = vld [vmem:[#allocation5 + $0x8] ss:$24 sps:$4 sm:$0xff]   ;;  %v1098_v33 = vld [vmem:[#allocation5 + $0x2dc] ss:$24 sps:$4 sm:$0xff]   ;;  %v1101_v35 = vld [vmem:[#allocation5 + $0x2d8] ss:$24 sps:$4 sm:$0xff]  }
  0x29   :  { %687 = vmatprep.subr.bf16.mxu1 %v1068_v13  ;;  %v1100_v34 = vld [vmem:[#allocation5 + $0x2d0] ss:$24 sps:$4 sm:$0xff]   ;;  %v1102_v36 = vld [vmem:[#allocation5 + $0x2a4] ss:$24 sps:$4 sm:$0xff]   ;;  %v1106_v38 = vld [vmem:[#allocation5 + $0x2a0] ss:$24 sps:$4 sm:$0xff]  }
  0x2a   :  { %v1104_v37 = vld [vmem:[#allocation5 + $0x2ac] ss:$24 sps:$4 sm:$0xff]   ;;  %v1107_v39 = vld [vmem:[#allocation5 + $0x2a8] ss:$24 sps:$4 sm:$0xff]   ;;  %v1110_v41 = vld [vmem:[#allocation5 + $0x27c] ss:$24 sps:$4 sm:$0xff]  }
  0x2b   :  { %635 = vmatpush1.bf16.msra.mxu0 %v1070_v14  ;;  %v1108_v40 = vld [vmem:[#allocation5 + $0x274] ss:$24 sps:$4 sm:$0xff]   ;;  %v1112_v42 = vld [vmem:[#allocation5 + $0x270] ss:$24 sps:$4 sm:$0xff]   ;;  %v1114_v44 = vld [vmem:[#allocation5 + $0x244] ss:$24 sps:$4 sm:$0xff]  }
  0x2c   :  { %688 = vmatpush1.bf16.msra.mxu1 %v1071_v15  ;;  %636 = vmatprep.subr.bf16.mxu0 %v1072_v16  ;;  %v1113_v43 = vld [vmem:[#allocation5 + $0x278] ss:$24 sps:$4 sm:$0xff]   ;;  %v1116_v45 = vld [vmem:[#allocation5 + $0x24c] ss:$24 sps:$4 sm:$0xff]   ;;  %v1119_v48 = vld [vmem:[#allocation5 + $0x248] ss:$24 sps:$4 sm:$0xff]  }
  0x2d   :  { %689 = vmatprep.subr.bf16.mxu1 %v1074_v17  ;;  %v41_v46 = vld [vmem:[#allocation2 + $0x8] sm:$0xff]  ;;  %v1118_v47 = vld [vmem:[#allocation5 + $0x240] ss:$24 sps:$4 sm:$0xff]   ;;  %v1122_v52 = vld [vmem:[#allocation5 + $0x21c] ss:$24 sps:$4 sm:$0xff]   ;;  %s1264_s0 = smov [#allocation7]  }
  0x2e   :  { %v43_v49 = vld [vmem:[#allocation2 + $0x18] sm:$0xff]  ;;  %v1120_v50 = vld [vmem:[#allocation5 + $0x214] ss:$24 sps:$4 sm:$0xff]   ;;  %v1124_v53 = vld [vmem:[#allocation5 + $0x210] ss:$24 sps:$4 sm:$0xff]   ;;  %s876_s1 = sshll.u32 %s1264_s0, 4  ;;  %s877_s1 = int_to_ptr.vmem [resolvable:$true] %s876_s1 }
  0x2f   :  { %637 = vmatpush1.bf16.msra.mxu0 %v1076_v18  ;;  %v1289_v51 = vpack.c.bf16 %v43_v49, %v41_v46  ;;  %v1125_v54 = vld [vmem:[#allocation5 + $0x218] ss:$24 sps:$4 sm:$0xff]   ;;  %v1126_v55 = vld [vmem:[#allocation5 + $0x1e4] ss:$24 sps:$4 sm:$0xff]   ;;  %v1131_v58 = vld [vmem:[#allocation5 + $0x1e8] ss:$24 sps:$4 sm:$0xff]   ;;  %p1237_p11 = scmp.lt.s32.totalorder %s877_s1, %s877_s1 }
  0x30   :  { %690 = vmatpush1.bf16.msra.mxu1 %v1077_v19  ;;  %638 = vmatprep.subr.bf16.mxu0 %v1078_v20  ;;  %v1128_v56 = vld [vmem:[#allocation5 + $0x1ec] ss:$24 sps:$4 sm:$0xff]   ;;  %v1130_v57 = vld [vmem:[#allocation5 + $0x1e0] ss:$24 sps:$4 sm:$0xff]   ;;  %v1134_v60 = vld [vmem:[#allocation5 + $0x1bc] ss:$24 sps:$4 sm:$0xff]  }
  0x31   :  { %691 = vmatprep.subr.bf16.mxu1 %v1080_v21  ;;  %660 = vmatprep.mubr.bf16.mxu0 %v1289_v51  ;;  %v1132_v59 = vld [vmem:[#allocation5 + $0x1b4] ss:$24 sps:$4 sm:$0xff]   ;;  %v1136_v61 = vld [vmem:[#allocation5 + $0x1b0] ss:$24 sps:$4 sm:$0xff]   ;;  %v1138_v63 = vld [vmem:[#allocation5 + $0x184] ss:$24 sps:$4 sm:$0xff]  }
  0x32   :  { %713 = vmatprep.mubr.bf16.mxu1 %v1289_v51  ;;  %v1137_v62 = vld [vmem:[#allocation5 + $0x1b8] ss:$24 sps:$4 sm:$0xff]   ;;  %v1140_v0 = vld [vmem:[#allocation5 + $0x18c] ss:$24 sps:$4 sm:$0xff]   ;;  %v1143_v2 = vld [vmem:[#allocation5 + $0x188] ss:$24 sps:$4 sm:$0xff]  }
  0x33   :  { %639 = vmatpush1.bf16.msra.mxu0 %v1082_v22  ;;  %v1142_v1 = vld [vmem:[#allocation5 + $0x180] ss:$24 sps:$4 sm:$0xff]   ;;  %v42_v4 = vld [vmem:[#allocation2 + $0x10] sm:$0xff]  ;;  %v1146_v5 = vld [vmem:[#allocation5 + $0x164] ss:$24 sps:$4 sm:$0xff]   ;;  %s1232_s23 = scalar_lea.vmem %s877_s1, 1536 }
  0x34   :  { %692 = vmatpush1.bf16.msra.mxu1 %v1083_v23  ;;  %640 = vmatprep.subr.bf16.mxu0 %v1084_v24  ;;  %v40_v3 = vld [vmem:[#allocation2] sm:$0xff]  ;;  %v45_v7 = vld [vmem:[#allocation2 + $0x28] sm:$0xff]  ;;  %v47_v8 = vld [vmem:[#allocation2 + $0x38] sm:$0xff]  ;;  %p1233_p10 = scmp.ne.s32.totalorder %s877_s1, %s1232_s23  ;;  %p1238_p12 = scmp.lt.s32.totalorder %s1232_s23, %s1232_s23 }
  0x35   :  { %693 = vmatprep.subr.bf16.mxu1 %v1086_v25  ;;  %v1293_v6 = vpack.c.bf16 %v42_v4, %v40_v3  ;;  %v1144_v9 = vld [vmem:[#allocation5 + $0x160] ss:$24 sps:$4 sm:$0xff]   ;;  %v1149_v10 = vld [vmem:[#allocation5 + $0x134] ss:$24 sps:$4 sm:$0xff]   ;;  %v51_v11 = vpack.c.bf16 %v47_v8, %v45_v7  ;;  %v1147_v12 = vld [vmem:[#allocation5 + $0x130] ss:$24 sps:$4 sm:$0xff]  }
  0x36   :  { %v44_v13 = vld [vmem:[#allocation2 + $0x20] sm:$0xff]  ;;  %v46_v14 = vld [vmem:[#allocation2 + $0x30] sm:$0xff]  ;;  %p1239_p13 = por %p1238_p12, %p1237_p11 }
  0x37   :  { %641 = vmatpush1.bf16.msra.mxu0 %v1088_v26  ;;  %v1152_v15 = vld [vmem:[#allocation5 + $0x104] ss:$24 sps:$4 sm:$0xff]   ;;  %v1297_v16 = vpack.c.bf16 %v46_v14, %v44_v13  ;;  %v1150_v17 = vld [vmem:[#allocation5 + $0x100] ss:$24 sps:$4 sm:$0xff]   ;;  %v1155_v18 = vld [vmem:[#allocation5 + $0xd4] ss:$24 sps:$4 sm:$0xff]  }
  0x38   :  { %694 = vmatpush1.bf16.msra.mxu1 %v1089_v27  ;;  %642 = vmatprep.subr.bf16.mxu0 %v1090_v28  ;;  %v1153_v19 = vld [vmem:[#allocation5 + $0xd0] ss:$24 sps:$4 sm:$0xff]   ;;  %v1158_v20 = vld [vmem:[#allocation5 + $0xa4] ss:$24 sps:$4 sm:$0xff]   ;;  %v1156_v21 = vld [vmem:[#allocation5 + $0xa0] ss:$24 sps:$4 sm:$0xff]   ;;  %p1240_p0 = pnand %p1239_p13, %p1233_p10 }
  0x39   :  { %695 = vmatprep.subr.bf16.mxu1 %v1092_v29  ;;  %v1161_v22 = vld [vmem:[#allocation5 + $0x74] ss:$24 sps:$4 sm:$0xff]   ;;  %v1159_v23 = vld [vmem:[#allocation5 + $0x70] ss:$24 sps:$4 sm:$0xff]   ;;  %v1164_v24 = vld [vmem:[#allocation5 + $0x44] ss:$24 sps:$4 sm:$0xff]  }
  0x3a   :  { %v1162_v25 = vld [vmem:[#allocation5 + $0x40] ss:$24 sps:$4 sm:$0xff]   ;;  %v1167_v26 = vld [vmem:[#allocation5 + $0x14] ss:$24 sps:$4 sm:$0xff]   ;;  %v1165_v27 = vld [vmem:[#allocation5 + $0x10] ss:$24 sps:$4 sm:$0xff]  }
  0x3b   :  { %643 = vmatpush1.bf16.msra.mxu0 %v1094_v30  ;;  %v1170_v28 = vld [vmem:[#allocation5 + $0x2e4] ss:$24 sps:$4 sm:$0xff]   ;;  %v1168_v29 = vld [vmem:[#allocation5 + $0x2e0] ss:$24 sps:$4 sm:$0xff]   ;;  %v1173_v30 = vld [vmem:[#allocation5 + $0x2b4] ss:$24 sps:$4 sm:$0xff]  }
  0x3c   :  { %696 = vmatpush1.bf16.msra.mxu1 %v1095_v31  ;;  %644 = vmatprep.subr.bf16.mxu0 %v1096_v32  ;;  %v1171_v31 = vld [vmem:[#allocation5 + $0x2b0] ss:$24 sps:$4 sm:$0xff]   ;;  %v1176_v32 = vld [vmem:[#allocation5 + $0x284] ss:$24 sps:$4 sm:$0xff]  }
  0x3d   :  { %697 = vmatprep.subr.bf16.mxu1 %v1098_v33  ;;  %v1174_v33 = vld [vmem:[#allocation5 + $0x280] ss:$24 sps:$4 sm:$0xff]  }
  0x3f   :  { %645 = vmatpush2.bf16.msra.mxu0 %v1100_v34  ;;  %v1179_v34 = vld [vmem:[#allocation5 + $0x254] ss:$24 sps:$4 sm:$0xff]  }
  0x40   :  { %698 = vmatpush2.bf16.msra.mxu1 %v1101_v35  ;;  %646 = vmatprep.subr.bf16.mxu0 %v1102_v36  ;;  %v1177_v35 = vld [vmem:[#allocation5 + $0x250] ss:$24 sps:$4 sm:$0xff]   ;;  %v1182_v36 = vld [vmem:[#allocation5 + $0x224] ss:$24 sps:$4 sm:$0xff]  }
  0x41   :  { %699 = vmatprep.subr.bf16.mxu1 %v1104_v37  ;;  %v1180_v37 = vld [vmem:[#allocation5 + $0x220] ss:$24 sps:$4 sm:$0xff]  }
  0x43   :  { %647 = vmatpush2.bf16.msra.mxu0 %v1106_v38  ;;  %v1185_v38 = vld [vmem:[#allocation5 + $0x1f4] ss:$24 sps:$4 sm:$0xff]  }
  0x44   :  { %700 = vmatpush2.bf16.msra.mxu1 %v1107_v39  ;;  %648 = vmatprep.subr.bf16.mxu0 %v1108_v40  ;;  %v1183_v39 = vld [vmem:[#allocation5 + $0x1f0] ss:$24 sps:$4 sm:$0xff]   ;;  %v1188_v40 = vld [vmem:[#allocation5 + $0x1c4] ss:$24 sps:$4 sm:$0xff]  }
  0x45   :  { %701 = vmatprep.subr.bf16.mxu1 %v1110_v41  ;;  %v1186_v41 = vld [vmem:[#allocation5 + $0x1c0] ss:$24 sps:$4 sm:$0xff]  }
  0x47   :  { %649 = vmatpush2.bf16.msra.mxu0 %v1112_v42  ;;  %v1191_v42 = vld [vmem:[#allocation5 + $0x194] ss:$24 sps:$4 sm:$0xff]  }
  0x48   :  { %702 = vmatpush2.bf16.msra.mxu1 %v1113_v43  ;;  %650 = vmatprep.subr.bf16.mxu0 %v1114_v44  ;;  %v1189_v43 = vld [vmem:[#allocation5 + $0x190] ss:$24 sps:$4 sm:$0xff]  }
  0x49   :  { %703 = vmatprep.subr.bf16.mxu1 %v1116_v45 }
  0x4b   :  { %651 = vmatpush2.bf16.msra.mxu0 %v1118_v47 }
  0x4c   :  { %704 = vmatpush2.bf16.msra.mxu1 %v1119_v48  ;;  %652 = vmatprep.subr.bf16.mxu0 %v1120_v50 }
  0x4d   :  { %705 = vmatprep.subr.bf16.mxu1 %v1122_v52 }
  0x4f   :  { %653 = vmatpush2.bf16.msra.mxu0 %v1124_v53 }
  0x50   :  { %706 = vmatpush2.bf16.msra.mxu1 %v1125_v54  ;;  %654 = vmatprep.subr.bf16.mxu0 %v1126_v55 }
  0x51   :  { %707 = vmatprep.subr.bf16.mxu1 %v1128_v56 }
  0x53   :  { %655 = vmatpush2.bf16.msra.mxu0 %v1130_v57 }
  0x54   :  { %708 = vmatpush2.bf16.msra.mxu1 %v1131_v58  ;;  %656 = vmatprep.subr.bf16.mxu0 %v1132_v59 }
  0x55   :  { %709 = vmatprep.subr.bf16.mxu1 %v1134_v60 }
  0x57   :  { %657 = vmatpush2.bf16.msra.mxu0 %v1136_v61 }
  0x58   :  { %710 = vmatpush2.bf16.msra.mxu1 %v1137_v62  ;;  %658 = vmatprep.subr.bf16.mxu0 %v1138_v63 }
  0x59   :  { %711 = vmatprep.subr.bf16.mxu1 %v1140_v0 }
  0x5b   :  { %659 = vmatpush2.bf16.msra.mxu0 %v1142_v1 }
  0x5c   :  { %712 = vmatpush2.bf16.msra.mxu1 %v1143_v2  ;;  %734 = vmatprep.subr.bf16.mxu0 %v1146_v5 }
  0x5d   :  { %1009 = vmatprep.subr.bf16.mxu1 %v1146_v5 }
  0x5e   :  { %661 = vmatmul.mubr.bf16.vlgmr.msra.gmra.mxu0 %v1293_v6 }
  0x5f   :  { %714 = vmatmul.mubr.bf16.vlgmr.msra.gmra.mxu1 %v1293_v6  ;;  %735 = vmatpush1.bf16.msra.mxu0 %v1144_v9 }
  0x60   :  { %1025 = vmatpush1.bf16.msra.mxu1 %v1144_v9  ;;  %736 = vmatprep.subr.bf16.mxu0 %v1149_v10 }
  0x61   :  { %1010 = vmatprep.subr.bf16.mxu1 %v1149_v10  ;;  %670 = vmatprep.mubr.bf16.mxu0 %v51_v11 }
  0x62   :  { %723 = vmatprep.mubr.bf16.mxu1 %v51_v11 }
  0x63   :  { %737 = vmatpush1.bf16.msra.mxu0 %v1147_v12 }
  0x64   :  { %1026 = vmatpush1.bf16.msra.mxu1 %v1147_v12  ;;  %738 = vmatprep.subr.bf16.mxu0 %v1152_v15 }
  0x65   :  { %1011 = vmatprep.subr.bf16.mxu1 %v1152_v15 }
  0x66   :  { %671 = vmatmul.mubr.bf16.gmra.mxu0 %v1297_v16 }
  0x67   :  { %724 = vmatmul.mubr.bf16.gmra.mxu1 %v1297_v16  ;;  %739 = vmatpush1.bf16.msra.mxu0 %v1150_v17 }
  0x68   :  { %1027 = vmatpush1.bf16.msra.mxu1 %v1150_v17  ;;  %740 = vmatprep.subr.bf16.mxu0 %v1155_v18 }
  0x69   :  { %1012 = vmatprep.subr.bf16.mxu1 %v1155_v18  ;;  %766 = vmatprep.mubr.bf16.mxu0 %v1289_v51 }
  0x6a   :  { %776 = vmatprep.mubr.bf16.mxu1 %v51_v11 }
  0x6b   :  { %741 = vmatpush1.bf16.msra.mxu0 %v1153_v19 }
  0x6c   :  { %1028 = vmatpush1.bf16.msra.mxu1 %v1153_v19  ;;  %742 = vmatprep.subr.bf16.mxu0 %v1158_v20 }
  0x6d   :  { %1013 = vmatprep.subr.bf16.mxu1 %v1158_v20 }
  0x6f   :  { %743 = vmatpush1.bf16.msra.mxu0 %v1156_v21 }
  0x70   :  { %1029 = vmatpush1.bf16.msra.mxu1 %v1156_v21  ;;  %744 = vmatprep.subr.bf16.mxu0 %v1161_v22 }
  0x71   :  { %1014 = vmatprep.subr.bf16.mxu1 %v1161_v22 }
  0x73   :  { %745 = vmatpush1.bf16.msra.mxu0 %v1159_v23 }
  0x74   :  { %1030 = vmatpush1.bf16.msra.mxu1 %v1159_v23  ;;  %746 = vmatprep.subr.bf16.mxu0 %v1164_v24 }
  0x75   :  { %1015 = vmatprep.subr.bf16.mxu1 %v1164_v24 }
  0x77   :  { %747 = vmatpush1.bf16.msra.mxu0 %v1162_v25 }
  0x78   :  { %1031 = vmatpush1.bf16.msra.mxu1 %v1162_v25  ;;  %748 = vmatprep.subr.bf16.mxu0 %v1167_v26 }
  0x79   :  { %1016 = vmatprep.subr.bf16.mxu1 %v1167_v26 }
  0x7b   :  { %749 = vmatpush1.bf16.msra.mxu0 %v1165_v27 }
  0x7c   :  { %1032 = vmatpush1.bf16.msra.mxu1 %v1165_v27  ;;  %750 = vmatprep.subr.bf16.mxu0 %v1170_v28 }
  0x7d   :  { %1017 = vmatprep.subr.bf16.mxu1 %v1170_v28 }
  0x7f   :  { %751 = vmatpush2.bf16.msra.mxu0 %v1168_v29 }
  0x80   :  { %1033 = vmatpush2.bf16.msra.mxu1 %v1168_v29  ;;  %752 = vmatprep.subr.bf16.mxu0 %v1173_v30 }
  0x81   :  { %1018 = vmatprep.subr.bf16.mxu1 %v1173_v30 }
  0x83   :  { %753 = vmatpush2.bf16.msra.mxu0 %v1171_v31 }
  0x84   :  { %1034 = vmatpush2.bf16.msra.mxu1 %v1171_v31  ;;  %754 = vmatprep.subr.bf16.mxu0 %v1176_v32 }
  0x85   :  { %1019 = vmatprep.subr.bf16.mxu1 %v1176_v32 }
  0x87   :  { %755 = vmatpush2.bf16.msra.mxu0 %v1174_v33 }
  0x88   :  { %1035 = vmatpush2.bf16.msra.mxu1 %v1174_v33  ;;  %756 = vmatprep.subr.bf16.mxu0 %v1179_v34 }
  0x89   :  { %1020 = vmatprep.subr.bf16.mxu1 %v1179_v34 }
  0x8b   :  { %757 = vmatpush2.bf16.msra.mxu0 %v1177_v35 }
  0x8c   :  { %1036 = vmatpush2.bf16.msra.mxu1 %v1177_v35  ;;  %758 = vmatprep.subr.bf16.mxu0 %v1182_v36 }
  0x8d   :  { %1021 = vmatprep.subr.bf16.mxu1 %v1182_v36 }
  0x8f   :  { %759 = vmatpush2.bf16.msra.mxu0 %v1180_v37 }
  0x90   :  { %1037 = vmatpush2.bf16.msra.mxu1 %v1180_v37  ;;  %760 = vmatprep.subr.bf16.mxu0 %v1185_v38 }
  0x91   :  { %1022 = vmatprep.subr.bf16.mxu1 %v1185_v38 }
  0x93   :  { %761 = vmatpush2.bf16.msra.mxu0 %v1183_v39 }
  0x94   :  { %1038 = vmatpush2.bf16.msra.mxu1 %v1183_v39  ;;  %762 = vmatprep.subr.bf16.mxu0 %v1188_v40 }
  0x95   :  { %1023 = vmatprep.subr.bf16.mxu1 %v1188_v40 }
  0x97   :  { %763 = vmatpush2.bf16.msra.mxu0 %v1186_v41 }
  0x98   :  { %1039 = vmatpush2.bf16.msra.mxu1 %v1186_v41  ;;  %764 = vmatprep.subr.bf16.mxu0 %v1191_v42 }
  0x99   :  { %1024 = vmatprep.subr.bf16.mxu1 %v1191_v42 }
  0x9b   :  { %765 = vmatpush2.bf16.msra.mxu0 %v1189_v43 }
  0x9c   :  { %1040 = vmatpush2.bf16.msra.mxu1 %v1189_v43 }
  0x9e   :  { %767 = vmatmul.mubr.bf16.vlgmr.msra.gmra.mxu0 %v1293_v6 }
  0x9f   :  { %777 = vmatmul.mubr.bf16.vlgmr.msra.gmra.mxu1 %v1297_v16 }
 0x11e   :  { %v662_v44 = vpop.f32.mrf.mxu0 }
 0x11f   :  { %v715_v45 = vpop.f32.mrf.mxu1 }
 0x120   :  { %v664_v46 = vpop.f32.mrf.mxu0 }
 0x121   :  { %v717_v47 = vpop.f32.mrf.mxu1  ;;  %v997_v48 = vpack.c.bf16 %v664_v46, %v662_v44 }
 0x122   :  { %v998_v49 = vpack.c.bf16 %v717_v47, %v715_v45  ;;  %v666_v50 = vpop.f32.mrf.mxu0 }
 0x123   :  { %v719_v51 = vpop.f32.mrf.mxu1  ;;  %859 = vst [vmem:[#allocation7] sm:$0xff] %v997_v48 }
 0x124   :  { %860 = vst [vmem:[#allocation7 + $0x8] sm:$0xff] %v998_v49  ;;  %v668_v52 = vpop.f32.mrf.mxu0 }
 0x125   :  { %v721_v53 = vpop.f32.mrf.mxu1  ;;  %v1000_v54 = vpack.c.bf16 %v668_v52, %v666_v50 }
 0x126   :  { %v1001_v55 = vpack.c.bf16 %v721_v53, %v719_v51  ;;  %v672_v56 = vpop.f32.mrf.mxu0 }
 0x127   :  { %v725_v57 = vpop.f32.mrf.mxu1  ;;  %862 = vst [vmem:[#allocation7 + $0x18] sm:$0xff] %v1000_v54 }
 0x128   :  { %863 = vst [vmem:[#allocation7 + $0x20] sm:$0xff] %v1001_v55  ;;  %v674_v58 = vpop.f32.mrf.mxu0 }
 0x129   :  { %v727_v59 = vpop.f32.mrf.mxu1  ;;  %v1003_v60 = vpack.c.bf16 %v674_v58, %v672_v56 }
 0x12a   :  { %v1004_v61 = vpack.c.bf16 %v727_v59, %v725_v57  ;;  %v676_v62 = vpop.f32.mrf.mxu0 }
 0x12b   :  { %v729_v63 = vpop.f32.mrf.mxu1  ;;  %865 = vst [vmem:[#allocation7 + $0x30] sm:$0xff] %v1003_v60 }
 0x12c   :  { %866 = vst [vmem:[#allocation7 + $0x38] sm:$0xff] %v1004_v61  ;;  %v678_v0 = vpop.f32.mrf.mxu0 }
 0x12d   :  { %v731_v1 = vpop.f32.mrf.mxu1  ;;  %v1006_v2 = vpack.c.bf16 %v678_v0, %v676_v62 }
 0x12e   :  { %v1007_v3 = vpack.c.bf16 %v731_v1, %v729_v63 }
 0x12f   :  { %868 = vst [vmem:[#allocation7 + $0x48] sm:$0xff] %v1006_v2 }
 0x130   :  { %869 = vst [vmem:[#allocation7 + $0x50] sm:$0xff] %v1007_v3 }
 0x15e   :  { %v768_v4 = vpop.f32.mrf.mxu0 }
 0x15f   :  { %v778_v5 = vpop.f32.mrf.mxu1 }
 0x160   :  { %v770_v6 = vpop.f32.mrf.mxu0 }
 0x161   :  { %v780_v7 = vpop.f32.mrf.mxu1  ;;  %v999_v8 = vpack.c.bf16 %v770_v6, %v768_v4 }
 0x162   :  { %v1005_v9 = vpack.c.bf16 %v780_v7, %v778_v5  ;;  %v772_v10 = vpop.f32.mrf.mxu0 }
 0x163   :  { %v782_v11 = vpop.f32.mrf.mxu1  ;;  %861 = vst [vmem:[#allocation7 + $0x10] sm:$0xff] %v999_v8 }
 0x164   :  { %867 = vst [vmem:[#allocation7 + $0x40] sm:$0xff] %v1005_v9  ;;  %v774_v12 = vpop.f32.mrf.mxu0 }
 0x165   :  { %v784_v13 = vpop.f32.mrf.mxu1  ;;  %v1002_v14 = vpack.c.bf16 %v774_v12, %v772_v10 }
 0x166   :  { %v1008_v15 = vpack.c.bf16 %v784_v13, %v782_v11 }
 0x167   :  { %864 = vst [vmem:[#allocation7 + $0x28] sm:$0xff] %v1002_v14 }
 0x168   :  { %870 = vst [vmem:[#allocation7 + $0x58] sm:$0xff] %v1008_v15 }
 0x169   :  { %1243 = shalt.err (!%p1240_p0)
}
 0x16a   :  { %882 = dma.vmem_to_hbm [thread:$0]  %s877_s1, 1536, %s1312_s2, [#allocation4], %s1262_s19, %s1262_s19, %s1263_s20  }
 0x16b   :  { %1256 = dma.done.wait [#allocation4], 1536  }
 0x16c   :  { %1257 = vsyncadd [#allocation4], 4294965760 }
 0x16d   :  { %886 = vsyncpa [#allocation3], 1 }
 0x16e   :  { %887 = vsyncpa [#allocation6], 1 }
 0x16f   :  { %888 = vsyncpa [#allocation4], 1 }

</bundles_post_ra>
